<compile_context>
chip_gen: v6e
topology: v6e:2x2x1
jax: 0.10.0
libtpu: 0.0.40
codegen_flags: <defaults>
</compile_context>

<pallas_src>
import jax
import jax.numpy as jnp
from jax.experimental import pallas as pl
from jax.experimental.pallas import tpu as pltpu


def _make_resblock_kernel(H, W, C, Nb):
    HW = H * W
    M = W + 1                                   # halo slack on each side
    taps = [(kh, kw) for kh in range(3) for kw in range(3)]

    def kernel(masks_ref, w_ref, b_ref, x_ref, o_ref, buf_ref, col_ref):
        # masks_ref: (2, 1, HW) bf16   [0]=left-col mask, [1]=right-col mask
        # w_ref:     (2, 2C, 9C) bf16  packed per-conv weights [conv1, conv2]
        # b_ref:     (2, 2C, 1)  f32   per-conv bias
        # x_ref:     (Nb, C, HW) f32   Nb images, channel-major flat spatial
        # o_ref:     (Nb, C, HW) f32
        # buf_ref:   (C, HW + 2M) bf16 zero-slacked staging buffer (shared)
        # col_ref:   (9C, HW)     bf16 im2col buffer (shared)

        # Zero only the halo slack (cheap), every step: interior is fully
        # rewritten per conv, so the slack alone carries the zero padding.
        zeros_slack = jnp.zeros((C, M), jnp.bfloat16)
        buf_ref[:, :M] = zeros_slack
        buf_ref[:, M + HW:] = zeros_slack

        mask_l = masks_ref[0]                   # (1, HW)
        mask_r = masks_ref[1]                   # (1, HW)

        def conv_mfm(src_bf16, conv_idx):
            # Stage the flat (C, HW) image once; out-of-image rows then read
            # the zeroed slack, i.e. the conv's zero padding, for free.
            buf_ref[:, M:M + HW] = src_bf16
            # im2col along K: each tap is a contiguous lane slice of the
            # slack buffer; kw=0/2 taps get the row-wrap-around column killed.
            for t, (kh, kw) in enumerate(taps):
                off = M + (kh - 1) * W + (kw - 1)
                tap = buf_ref[:, off:off + HW]              # (C, HW) bf16
                if kw == 0:
                    tap = tap * mask_l
                elif kw == 2:
                    tap = tap * mask_r
                col_ref[t * C:(t + 1) * C, :] = tap
            # Whole conv (both MFM halves) as one MXU matmul, f32 accumulate.
            y = jnp.dot(w_ref[conv_idx], col_ref[...],
                        preferred_element_type=jnp.float32)     # (2C, HW)
            y = y + b_ref[conv_idx]                             # (2C, 1) bias
            return jnp.maximum(y[:C], y[C:])                    # MFM max

        for i in range(Nb):                    # static unroll over the block
            x = x_ref[i]                                        # (C, HW) f32
            m1 = conv_mfm(x.astype(jnp.bfloat16), 0)            # conv1 + MFM
            m2 = conv_mfm(m1.astype(jnp.bfloat16), 1)           # conv2 + MFM
            o_ref[i] = (m2 + x).astype(o_ref.dtype)             # + residual

    return kernel


def _pick_images_per_step(N, C, HW):
    """Images per grid step: amortize the ~0.35us/step overhead for tiny
    blocks, keep grid >= 2 (megacore), cap the static unroll at 8."""
    per_image_io = 2 * C * HW * 4               # f32 x-block + o-block bytes
    target = max(1, (512 * 1024) // max(per_image_io, 1))
    for nb in range(min(N, target, 8), 0, -1):
        if N % nb == 0 and N // nb >= min(2, N):
            return nb
    return 1


def resblock_forward(x_nchw, params, images_per_step=None):
    """resblock forward. x_nchw: (N, C, H, W) f32; weights in HWIO layout."""
    N, C, H, W = x_nchw.shape
    HW = H * W
    w1, b1 = params["w1"], params["b1"]
    w2, b2 = params["w2"], params["b2"]
    Cout = w1.shape[-1] // 2
    assert Cout == C, "resblock residual add requires in_channels == out_channels"

    # (3,3,C,2C) HWIO -> (2C, 9C): row = output channel m, col = tap*C + cin,
    # matching the kernel's im2col row ordering (tap-major, cin-minor).
    def pack_w(w):
        return jnp.transpose(w.reshape(9, C, 2 * C), (2, 0, 1)).reshape(2 * C, 9 * C)

    wts = jnp.stack([pack_w(w1), pack_w(w2)], 0).astype(jnp.bfloat16)  # (2,2C,9C)
    bias = jnp.stack([b1, b2], 0).astype(jnp.float32)[..., None]       # (2,2C,1)

    # Column-validity masks for the kw=0 / kw=2 taps (flat-image wrap-around).
    col_idx = jnp.arange(HW, dtype=jnp.int32) % W
    masks = jnp.stack([col_idx != 0, col_idx != W - 1], 0)
    masks = masks.astype(jnp.bfloat16).reshape(2, 1, HW)               # (2,1,HW)

    x2d = x_nchw.reshape(N, C, HW)       # free reshape, stays channel-major
    B = HW + 2 * (W + 1)                 # flat image + halo slack

    Nb = images_per_step or _pick_images_per_step(N, C, HW)
    assert N % Nb == 0, (N, Nb)

    # Per-generation VMEM budget (~100 MiB on v5e/v6e, ~54 MiB on v7x).
    try:
        vmem_cap = pltpu.get_tpu_info().vmem_capacity_bytes
    except Exception:
        vmem_cap = 64 * 1024 * 1024
    vmem_limit = int(min(int(vmem_cap * 0.85), 100 * 1024 * 1024))

    out2d = pl.pallas_call(
        _make_resblock_kernel(H, W, C, Nb),
        out_shape=jax.ShapeDtypeStruct((N, C, HW), x_nchw.dtype),
        grid_spec=pltpu.PrefetchScalarGridSpec(
            num_scalar_prefetch=0,
            grid=(N // Nb,),                      # Nb images per grid step
            in_specs=[
                pl.BlockSpec((2, 1, HW), lambda n: (0, 0, 0)),
                pl.BlockSpec((2, 2 * C, 9 * C), lambda n: (0, 0, 0)),
                pl.BlockSpec((2, 2 * C, 1), lambda n: (0, 0, 0)),
                pl.BlockSpec((Nb, C, HW), lambda n: (n, 0, 0)),
            ],
            out_specs=pl.BlockSpec((Nb, C, HW), lambda n: (n, 0, 0)),
            scratch_shapes=[
                pltpu.VMEM((C, B), jnp.bfloat16),        # shared slack buffer
                pltpu.VMEM((9 * C, HW), jnp.bfloat16),   # shared im2col buffer
            ],
        ),
        compiler_params=pltpu.CompilerParams(
            dimension_semantics=("parallel",),           # batch across TCs
            vmem_limit_bytes=vmem_limit,
        ),
    )(masks, wts, bias, x2d)

    return out2d.reshape(N, C, H, W)


# ---------------- pure-JAX reference (for correctness check) ----------------
def _mfm_ref(x_nhwc, w, b):
    y = jax.lax.conv_general_dilated(
        x_nhwc, w, window_strides=(1, 1), padding="SAME",
        dimension_numbers=("NHWC", "HWIO", "NHWC")) + b
    c = w.shape[-1] // 2
    return jnp.maximum(y[..., :c], y[..., c:])


def _resblock_ref(x_nchw, params):
    x = jnp.transpose(x_nchw, (0, 2, 3, 1))
    out = _mfm_ref(x, params["w1"], params["b1"])
    out = _mfm_ref(out, params["w2"], params["b2"]) + x
    return jnp.transpose(out, (0, 3, 1, 2))


if __name__ == "__main__":
    # resblock(in_channels=C, out_channels=C): residual add requires equality.
    N, C, H, W = 2, 4, 16, 16

    key = jax.random.PRNGKey(0)
    kx, kw1, kb1, kw2, kb2 = jax.random.split(key, 5)

    x = jax.random.normal(kx, (N, C, H, W), jnp.float32)

    fan_in = 3 * 3 * C
    scale = 1.0 / jnp.sqrt(jnp.float32(fan_in))
    params = {
        "w1": jax.random.normal(kw1, (3, 3, C, 2 * C), jnp.float32) * scale,
        "b1": jax.random.normal(kb1, (2 * C,), jnp.float32) * scale,
        "w2": jax.random.normal(kw2, (3, 3, C, 2 * C), jnp.float32) * scale,
        "b2": jax.random.normal(kb2, (2 * C,), jnp.float32) * scale,
    }

    out = jax.block_until_ready(resblock_forward(x, params))
    ref = jax.block_until_ready(_resblock_ref(x, params))

    assert out.shape == (N, C, H, W), out.shape
    max_err = float(jnp.max(jnp.abs(out - ref)))
    # bf16 MXU operands (f32 accumulation) vs. f32 reference -> loosened tol.
    assert jnp.allclose(out, ref, atol=1e-1, rtol=1e-1), max_err
    print("KERNEL_OK")
</pallas_src>

<mosaic_0001>
module attributes {stable_mosaic.version = 11 : i64} {
  func.func @kernel(%arg0: i32, %arg1: memref<2x1x256xbf16, #tpu.memory_space<vmem>>, %arg2: memref<2x8x36xbf16, #tpu.memory_space<vmem>>, %arg3: memref<2x8x1xf32, #tpu.memory_space<vmem>>, %arg4: memref<1x4x256xf32, #tpu.memory_space<vmem>>, %arg5: memref<1x4x256xf32, #tpu.memory_space<vmem>>, %arg6: memref<4x290xbf16, #tpu.memory_space<vmem>>, %arg7: memref<36x256xbf16, #tpu.memory_space<vmem>>) attributes {dimension_semantics = [#tpu.dimension_semantics<parallel>], iteration_bounds = array<i64: 2>, scalar_prefetch = 0 : i64, scratch_operands = 2 : i64, tpu.core_type = #tpu.core_type<tc>, window_params = [{pipeline_mode = #tpu.pipeline_mode<synchronous>, transform_indices = @transform_0, window_bounds = array<i64: 2, 1, 256>}, {pipeline_mode = #tpu.pipeline_mode<synchronous>, transform_indices = @transform_1, window_bounds = array<i64: 2, 8, 36>}, {pipeline_mode = #tpu.pipeline_mode<synchronous>, transform_indices = @transform_2, window_bounds = array<i64: 2, 8, 1>}, {transform_indices = @transform_3, window_bounds = array<i64: 1, 4, 256>}, {transform_indices = @transform_4, window_bounds = array<i64: 1, 4, 256>}]} {
    %cst = arith.constant 0.000000e+00 : bf16
    %0 = vector.broadcast %cst : bf16 to vector<4x17xbf16>
    %c0 = arith.constant 0 : index
    %c0_0 = arith.constant 0 : index
    %1 = vector.load %arg6[%c0, %c0_0] : memref<4x290xbf16, #tpu.memory_space<vmem>>, vector<4x17xbf16>
    tpu.vector_store %arg6[%c0, %c0_0], %0 {strides = array<i32>} : memref<4x290xbf16, #tpu.memory_space<vmem>>, vector<4x17xbf16>,
    %c0_1 = arith.constant 0 : index
    %c273 = arith.constant 273 : index
    %2 = vector.load %arg6[%c0_1, %c273] : memref<4x290xbf16, #tpu.memory_space<vmem>>, vector<4x17xbf16>
    tpu.vector_store %arg6[%c0_1, %c273], %0 {strides = array<i32>} : memref<4x290xbf16, #tpu.memory_space<vmem>>, vector<4x17xbf16>,
    %c0_2 = arith.constant 0 : index
    %c0_3 = arith.constant 0 : index
    %c0_4 = arith.constant 0 : index
    %3 = vector.load %arg1[%c0_2, %c0_3, %c0_4] : memref<2x1x256xbf16, #tpu.memory_space<vmem>>, vector<1x1x256xbf16>
    %4 = vector.shape_cast %3 : vector<1x1x256xbf16> to vector<1x256xbf16>
    %c1 = arith.constant 1 : index
    %c0_5 = arith.constant 0 : index
    %c0_6 = arith.constant 0 : index
    %5 = vector.load %arg1[%c1, %c0_5, %c0_6] : memref<2x1x256xbf16, #tpu.memory_space<vmem>>, vector<1x1x256xbf16>
    %6 = vector.shape_cast %5 : vector<1x1x256xbf16> to vector<1x256xbf16>
    %c0_7 = arith.constant 0 : index
    %c0_8 = arith.constant 0 : index
    %c0_9 = arith.constant 0 : index
    %7 = vector.load %arg4[%c0_7, %c0_8, %c0_9] : memref<1x4x256xf32, #tpu.memory_space<vmem>>, vector<1x4x256xf32>
    %8 = vector.shape_cast %7 : vector<1x4x256xf32> to vector<4x256xf32>
    %9 = arith.truncf %8 : vector<4x256xf32> to vector<4x256xbf16>
    %c0_10 = arith.constant 0 : index
    %c17 = arith.constant 17 : index
    %10 = vector.load %arg6[%c0_10, %c17] : memref<4x290xbf16, #tpu.memory_space<vmem>>, vector<4x256xbf16>
    tpu.vector_store %arg6[%c0_10, %c17], %9 {strides = array<i32>} : memref<4x290xbf16, #tpu.memory_space<vmem>>, vector<4x256xbf16>,
    %c0_11 = arith.constant 0 : index
    %c0_12 = arith.constant 0 : index
    %11 = vector.load %arg6[%c0_11, %c0_12] : memref<4x290xbf16, #tpu.memory_space<vmem>>, vector<4x256xbf16>
    %12 = vector.broadcast %4 : vector<1x256xbf16> to vector<4x256xbf16>
    %13 = arith.mulf %11, %12 : vector<4x256xbf16>
    %c0_13 = arith.constant 0 : index
    %c0_14 = arith.constant 0 : index
    %14 = vector.load %arg7[%c0_13, %c0_14] : memref<36x256xbf16, #tpu.memory_space<vmem>>, vector<4x256xbf16>
    tpu.vector_store %arg7[%c0_13, %c0_14], %13 {strides = array<i32>} : memref<36x256xbf16, #tpu.memory_space<vmem>>, vector<4x256xbf16>,
    %c0_15 = arith.constant 0 : index
    %c1_16 = arith.constant 1 : index
    %15 = vector.load %arg6[%c0_15, %c1_16] : memref<4x290xbf16, #tpu.memory_space<vmem>>, vector<4x256xbf16>
    %c4 = arith.constant 4 : index
    %c0_17 = arith.constant 0 : index
    %16 = vector.load %arg7[%c4, %c0_17] : memref<36x256xbf16, #tpu.memory_space<vmem>>, vector<4x256xbf16>
    tpu.vector_store %arg7[%c4, %c0_17], %15 {strides = array<i32>} : memref<36x256xbf16, #tpu.memory_space<vmem>>, vector<4x256xbf16>,
    %c0_18 = arith.constant 0 : index
    %c2 = arith.constant 2 : index
    %17 = vector.load %arg6[%c0_18, %c2] : memref<4x290xbf16, #tpu.memory_space<vmem>>, vector<4x256xbf16>
    %18 = vector.broadcast %6 : vector<1x256xbf16> to vector<4x256xbf16>
    %19 = arith.mulf %17, %18 : vector<4x256xbf16>
    %c8 = arith.constant 8 : index
    %c0_19 = arith.constant 0 : index
    %20 = vector.load %arg7[%c8, %c0_19] : memref<36x256xbf16, #tpu.memory_space<vmem>>, vector<4x256xbf16>
    tpu.vector_store %arg7[%c8, %c0_19], %19 {strides = array<i32>} : memref<36x256xbf16, #tpu.memory_space<vmem>>, vector<4x256xbf16>,
    %c0_20 = arith.constant 0 : index
    %c16 = arith.constant 16 : index
    %21 = vector.load %arg6[%c0_20, %c16] : memref<4x290xbf16, #tpu.memory_space<vmem>>, vector<4x256xbf16>
    %22 = vector.broadcast %4 : vector<1x256xbf16> to vector<4x256xbf16>
    %23 = arith.mulf %21, %22 : vector<4x256xbf16>
    %c12 = arith.constant 12 : index
    %c0_21 = arith.constant 0 : index
    %24 = vector.load %arg7[%c12, %c0_21] : memref<36x256xbf16, #tpu.memory_space<vmem>>, vector<4x256xbf16>
    tpu.vector_store %arg7[%c12, %c0_21], %23 {strides = array<i32>} : memref<36x256xbf16, #tpu.memory_space<vmem>>, vector<4x256xbf16>,
    %c0_22 = arith.constant 0 : index
    %c17_23 = arith.constant 17 : index
    %25 = vector.load %arg6[%c0_22, %c17_23] : memref<4x290xbf16, #tpu.memory_space<vmem>>, vector<4x256xbf16>
    %c16_24 = arith.constant 16 : index
    %c0_25 = arith.constant 0 : index
    %26 = vector.load %arg7[%c16_24, %c0_25] : memref<36x256xbf16, #tpu.memory_space<vmem>>, vector<4x256xbf16>
    tpu.vector_store %arg7[%c16_24, %c0_25], %25 {strides = array<i32>} : memref<36x256xbf16, #tpu.memory_space<vmem>>, vector<4x256xbf16>,
    %c0_26 = arith.constant 0 : index
    %c18 = arith.constant 18 : index
    %27 = vector.load %arg6[%c0_26, %c18] : memref<4x290xbf16, #tpu.memory_space<vmem>>, vector<4x256xbf16>
    %28 = vector.broadcast %6 : vector<1x256xbf16> to vector<4x256xbf16>
    %29 = arith.mulf %27, %28 : vector<4x256xbf16>
    %c20 = arith.constant 20 : index
    %c0_27 = arith.constant 0 : index
    %30 = vector.load %arg7[%c20, %c0_27] : memref<36x256xbf16, #tpu.memory_space<vmem>>, vector<4x256xbf16>
    tpu.vector_store %arg7[%c20, %c0_27], %29 {strides = array<i32>} : memref<36x256xbf16, #tpu.memory_space<vmem>>, vector<4x256xbf16>,
    %c0_28 = arith.constant 0 : index
    %c32 = arith.constant 32 : index
    %31 = vector.load %arg6[%c0_28, %c32] : memref<4x290xbf16, #tpu.memory_space<vmem>>, vector<4x256xbf16>
    %32 = vector.broadcast %4 : vector<1x256xbf16> to vector<4x256xbf16>
    %33 = arith.mulf %31, %32 : vector<4x256xbf16>
    %c24 = arith.constant 24 : index
    %c0_29 = arith.constant 0 : index
    %34 = vector.load %arg7[%c24, %c0_29] : memref<36x256xbf16, #tpu.memory_space<vmem>>, vector<4x256xbf16>
    tpu.vector_store %arg7[%c24, %c0_29], %33 {strides = array<i32>} : memref<36x256xbf16, #tpu.memory_space<vmem>>, vector<4x256xbf16>,
    %c0_30 = arith.constant 0 : index
    %c33 = arith.constant 33 : index
    %35 = vector.load %arg6[%c0_30, %c33] : memref<4x290xbf16, #tpu.memory_space<vmem>>, vector<4x256xbf16>
    %c28 = arith.constant 28 : index
    %c0_31 = arith.constant 0 : index
    %36 = vector.load %arg7[%c28, %c0_31] : memref<36x256xbf16, #tpu.memory_space<vmem>>, vector<4x256xbf16>
    tpu.vector_store %arg7[%c28, %c0_31], %35 {strides = array<i32>} : memref<36x256xbf16, #tpu.memory_space<vmem>>, vector<4x256xbf16>,
    %c0_32 = arith.constant 0 : index
    %c34 = arith.constant 34 : index
    %37 = vector.load %arg6[%c0_32, %c34] : memref<4x290xbf16, #tpu.memory_space<vmem>>, vector<4x256xbf16>
    %38 = vector.broadcast %6 : vector<1x256xbf16> to vector<4x256xbf16>
    %39 = arith.mulf %37, %38 : vector<4x256xbf16>
    %c32_33 = arith.constant 32 : index
    %c0_34 = arith.constant 0 : index
    %40 = vector.load %arg7[%c32_33, %c0_34] : memref<36x256xbf16, #tpu.memory_space<vmem>>, vector<4x256xbf16>
    tpu.vector_store %arg7[%c32_33, %c0_34], %39 {strides = array<i32>} : memref<36x256xbf16, #tpu.memory_space<vmem>>, vector<4x256xbf16>,
    %c0_35 = arith.constant 0 : index
    %c0_36 = arith.constant 0 : index
    %c0_37 = arith.constant 0 : index
    %41 = vector.load %arg2[%c0_35, %c0_36, %c0_37] : memref<2x8x36xbf16, #tpu.memory_space<vmem>>, vector<1x8x36xbf16>
    %42 = vector.shape_cast %41 : vector<1x8x36xbf16> to vector<8x36xbf16>
    %c0_38 = arith.constant 0 : index
    %c0_39 = arith.constant 0 : index
    %43 = vector.load %arg7[%c0_38, %c0_39] : memref<36x256xbf16, #tpu.memory_space<vmem>>, vector<36x256xbf16>
    %cst_40 = arith.constant dense<0.000000e+00> : vector<8x256xf32>
    %44 = tpu.matmul %42, %43, %cst_40 {dimension_numbers = #tpu.dot_dimension_numbers<[1], [0], [0], [1], [0, 0, 1, 1], [], []>} : vector<8x36xbf16>, vector<36x256xbf16>, vector<8x256xf32> -> vector<8x256xf32>
    %c0_41 = arith.constant 0 : index
    %c0_42 = arith.constant 0 : index
    %c0_43 = arith.constant 0 : index
    %45 = vector.load %arg3[%c0_41, %c0_42, %c0_43] : memref<2x8x1xf32, #tpu.memory_space<vmem>>, vector<1x8x1xf32>
    %46 = vector.shape_cast %45 : vector<1x8x1xf32> to vector<8x1xf32>
    %47 = vector.broadcast %46 : vector<8x1xf32> to vector<8x256xf32>
    %48 = arith.addf %44, %47 : vector<8x256xf32>
    %49 = vector.extract_strided_slice %48 {offsets = [0, 0], sizes = [4, 256], strides = [1, 1]} : vector<8x256xf32> to vector<4x256xf32>
    %50 = vector.extract_strided_slice %48 {offsets = [4, 0], sizes = [4, 256], strides = [1, 1]} : vector<8x256xf32> to vector<4x256xf32>
    %51 = arith.maximumf %49, %50 : vector<4x256xf32>
    %52 = arith.truncf %51 : vector<4x256xf32> to vector<4x256xbf16>
    %c0_44 = arith.constant 0 : index
    %c17_45 = arith.constant 17 : index
    %53 = vector.load %arg6[%c0_44, %c17_45] : memref<4x290xbf16, #tpu.memory_space<vmem>>, vector<4x256xbf16>
    tpu.vector_store %arg6[%c0_44, %c17_45], %52 {strides = array<i32>} : memref<4x290xbf16, #tpu.memory_space<vmem>>, vector<4x256xbf16>,
    %c0_46 = arith.constant 0 : index
    %c0_47 = arith.constant 0 : index
    %54 = vector.load %arg6[%c0_46, %c0_47] : memref<4x290xbf16, #tpu.memory_space<vmem>>, vector<4x256xbf16>
    %55 = vector.broadcast %4 : vector<1x256xbf16> to vector<4x256xbf16>
    %56 = arith.mulf %54, %55 : vector<4x256xbf16>
    %c0_48 = arith.constant 0 : index
    %c0_49 = arith.constant 0 : index
    %57 = vector.load %arg7[%c0_48, %c0_49] : memref<36x256xbf16, #tpu.memory_space<vmem>>, vector<4x256xbf16>
    tpu.vector_store %arg7[%c0_48, %c0_49], %56 {strides = array<i32>} : memref<36x256xbf16, #tpu.memory_space<vmem>>, vector<4x256xbf16>,
    %c0_50 = arith.constant 0 : index
    %c1_51 = arith.constant 1 : index
    %58 = vector.load %arg6[%c0_50, %c1_51] : memref<4x290xbf16, #tpu.memory_space<vmem>>, vector<4x256xbf16>
    %c4_52 = arith.constant 4 : index
    %c0_53 = arith.constant 0 : index
    %59 = vector.load %arg7[%c4_52, %c0_53] : memref<36x256xbf16, #tpu.memory_space<vmem>>, vector<4x256xbf16>
    tpu.vector_store %arg7[%c4_52, %c0_53], %58 {strides = array<i32>} : memref<36x256xbf16, #tpu.memory_space<vmem>>, vector<4x256xbf16>,
    %c0_54 = arith.constant 0 : index
    %c2_55 = arith.constant 2 : index
    %60 = vector.load %arg6[%c0_54, %c2_55] : memref<4x290xbf16, #tpu.memory_space<vmem>>, vector<4x256xbf16>
    %61 = vector.broadcast %6 : vector<1x256xbf16> to vector<4x256xbf16>
    %62 = arith.mulf %60, %61 : vector<4x256xbf16>
    %c8_56 = arith.constant 8 : index
    %c0_57 = arith.constant 0 : index
    %63 = vector.load %arg7[%c8_56, %c0_57] : memref<36x256xbf16, #tpu.memory_space<vmem>>, vector<4x256xbf16>
    tpu.vector_store %arg7[%c8_56, %c0_57], %62 {strides = array<i32>} : memref<36x256xbf16, #tpu.memory_space<vmem>>, vector<4x256xbf16>,
    %c0_58 = arith.constant 0 : index
    %c16_59 = arith.constant 16 : index
    %64 = vector.load %arg6[%c0_58, %c16_59] : memref<4x290xbf16, #tpu.memory_space<vmem>>, vector<4x256xbf16>
    %65 = vector.broadcast %4 : vector<1x256xbf16> to vector<4x256xbf16>
    %66 = arith.mulf %64, %65 : vector<4x256xbf16>
    %c12_60 = arith.constant 12 : index
    %c0_61 = arith.constant 0 : index
    %67 = vector.load %arg7[%c12_60, %c0_61] : memref<36x256xbf16, #tpu.memory_space<vmem>>, vector<4x256xbf16>
    tpu.vector_store %arg7[%c12_60, %c0_61], %66 {strides = array<i32>} : memref<36x256xbf16, #tpu.memory_space<vmem>>, vector<4x256xbf16>,
    %c0_62 = arith.constant 0 : index
    %c17_63 = arith.constant 17 : index
    %68 = vector.load %arg6[%c0_62, %c17_63] : memref<4x290xbf16, #tpu.memory_space<vmem>>, vector<4x256xbf16>
    %c16_64 = arith.constant 16 : index
    %c0_65 = arith.constant 0 : index
    %69 = vector.load %arg7[%c16_64, %c0_65] : memref<36x256xbf16, #tpu.memory_space<vmem>>, vector<4x256xbf16>
    tpu.vector_store %arg7[%c16_64, %c0_65], %68 {strides = array<i32>} : memref<36x256xbf16, #tpu.memory_space<vmem>>, vector<4x256xbf16>,
    %c0_66 = arith.constant 0 : index
    %c18_67 = arith.constant 18 : index
    %70 = vector.load %arg6[%c0_66, %c18_67] : memref<4x290xbf16, #tpu.memory_space<vmem>>, vector<4x256xbf16>
    %71 = vector.broadcast %6 : vector<1x256xbf16> to vector<4x256xbf16>
    %72 = arith.mulf %70, %71 : vector<4x256xbf16>
    %c20_68 = arith.constant 20 : index
    %c0_69 = arith.constant 0 : index
    %73 = vector.load %arg7[%c20_68, %c0_69] : memref<36x256xbf16, #tpu.memory_space<vmem>>, vector<4x256xbf16>
    tpu.vector_store %arg7[%c20_68, %c0_69], %72 {strides = array<i32>} : memref<36x256xbf16, #tpu.memory_space<vmem>>, vector<4x256xbf16>,
    %c0_70 = arith.constant 0 : index
    %c32_71 = arith.constant 32 : index
    %74 = vector.load %arg6[%c0_70, %c32_71] : memref<4x290xbf16, #tpu.memory_space<vmem>>, vector<4x256xbf16>
    %75 = vector.broadcast %4 : vector<1x256xbf16> to vector<4x256xbf16>
    %76 = arith.mulf %74, %75 : vector<4x256xbf16>
    %c24_72 = arith.constant 24 : index
    %c0_73 = arith.constant 0 : index
    %77 = vector.load %arg7[%c24_72, %c0_73] : memref<36x256xbf16, #tpu.memory_space<vmem>>, vector<4x256xbf16>
    tpu.vector_store %arg7[%c24_72, %c0_73], %76 {strides = array<i32>} : memref<36x256xbf16, #tpu.memory_space<vmem>>, vector<4x256xbf16>,
    %c0_74 = arith.constant 0 : index
    %c33_75 = arith.constant 33 : index
    %78 = vector.load %arg6[%c0_74, %c33_75] : memref<4x290xbf16, #tpu.memory_space<vmem>>, vector<4x256xbf16>
    %c28_76 = arith.constant 28 : index
    %c0_77 = arith.constant 0 : index
    %79 = vector.load %arg7[%c28_76, %c0_77] : memref<36x256xbf16, #tpu.memory_space<vmem>>, vector<4x256xbf16>
    tpu.vector_store %arg7[%c28_76, %c0_77], %78 {strides = array<i32>} : memref<36x256xbf16, #tpu.memory_space<vmem>>, vector<4x256xbf16>,
    %c0_78 = arith.constant 0 : index
    %c34_79 = arith.constant 34 : index
    %80 = vector.load %arg6[%c0_78, %c34_79] : memref<4x290xbf16, #tpu.memory_space<vmem>>, vector<4x256xbf16>
    %81 = vector.broadcast %6 : vector<1x256xbf16> to vector<4x256xbf16>
    %82 = arith.mulf %80, %81 : vector<4x256xbf16>
    %c32_80 = arith.constant 32 : index
    %c0_81 = arith.constant 0 : index
    %83 = vector.load %arg7[%c32_80, %c0_81] : memref<36x256xbf16, #tpu.memory_space<vmem>>, vector<4x256xbf16>
    tpu.vector_store %arg7[%c32_80, %c0_81], %82 {strides = array<i32>} : memref<36x256xbf16, #tpu.memory_space<vmem>>, vector<4x256xbf16>,
    %c1_82 = arith.constant 1 : index
    %c0_83 = arith.constant 0 : index
    %c0_84 = arith.constant 0 : index
    %84 = vector.load %arg2[%c1_82, %c0_83, %c0_84] : memref<2x8x36xbf16, #tpu.memory_space<vmem>>, vector<1x8x36xbf16>
    %85 = vector.shape_cast %84 : vector<1x8x36xbf16> to vector<8x36xbf16>
    %c0_85 = arith.constant 0 : index
    %c0_86 = arith.constant 0 : index
    %86 = vector.load %arg7[%c0_85, %c0_86] : memref<36x256xbf16, #tpu.memory_space<vmem>>, vector<36x256xbf16>
    %cst_87 = arith.constant dense<0.000000e+00> : vector<8x256xf32>
    %87 = tpu.matmul %85, %86, %cst_87 {dimension_numbers = #tpu.dot_dimension_numbers<[1], [0], [0], [1], [0, 0, 1, 1], [], []>} : vector<8x36xbf16>, vector<36x256xbf16>, vector<8x256xf32> -> vector<8x256xf32>
    %c1_88 = arith.constant 1 : index
    %c0_89 = arith.constant 0 : index
    %c0_90 = arith.constant 0 : index
    %88 = vector.load %arg3[%c1_88, %c0_89, %c0_90] : memref<2x8x1xf32, #tpu.memory_space<vmem>>, vector<1x8x1xf32>
    %89 = vector.shape_cast %88 : vector<1x8x1xf32> to vector<8x1xf32>
    %90 = vector.broadcast %89 : vector<8x1xf32> to vector<8x256xf32>
    %91 = arith.addf %87, %90 : vector<8x256xf32>
    %92 = vector.extract_strided_slice %91 {offsets = [0, 0], sizes = [4, 256], strides = [1, 1]} : vector<8x256xf32> to vector<4x256xf32>
    %93 = vector.extract_strided_slice %91 {offsets = [4, 0], sizes = [4, 256], strides = [1, 1]} : vector<8x256xf32> to vector<4x256xf32>
    %94 = arith.maximumf %92, %93 : vector<4x256xf32>
    %95 = arith.addf %94, %8 : vector<4x256xf32>
    %c0_91 = arith.constant 0 : index
    %c0_92 = arith.constant 0 : index
    %c0_93 = arith.constant 0 : index
    %96 = vector.load %arg5[%c0_91, %c0_92, %c0_93] : memref<1x4x256xf32, #tpu.memory_space<vmem>>, vector<1x4x256xf32>
    %97 = vector.shape_cast %96 : vector<1x4x256xf32> to vector<4x256xf32>
    %98 = vector.shape_cast %95 : vector<4x256xf32> to vector<1x4x256xf32>
    tpu.vector_store %arg5[%c0_91, %c0_92, %c0_93], %98 {strides = array<i32>} : memref<1x4x256xf32, #tpu.memory_space<vmem>>, vector<1x4x256xf32>,
    return
  }
  func.func @transform_0(%arg0: i32) -> (i32, i32, i32) {
    %c0_i32 = arith.constant 0 : i32
    %c0_i32_0 = arith.constant 0 : i32
    %c0_i32_1 = arith.constant 0 : i32
    %c0_i32_2 = arith.constant 0 : i32
    return %c0_i32, %c0_i32_0, %c0_i32_1 : i32, i32, i32
  }
  func.func @transform_1(%arg0: i32) -> (i32, i32, i32) {
    %c0_i32 = arith.constant 0 : i32
    %c0_i32_0 = arith.constant 0 : i32
    %c0_i32_1 = arith.constant 0 : i32
    %c0_i32_2 = arith.constant 0 : i32
    return %c0_i32, %c0_i32_0, %c0_i32_1 : i32, i32, i32
  }
  func.func @transform_2(%arg0: i32) -> (i32, i32, i32) {
    %c0_i32 = arith.constant 0 : i32
    %c0_i32_0 = arith.constant 0 : i32
    %c0_i32_1 = arith.constant 0 : i32
    %c0_i32_2 = arith.constant 0 : i32
    return %c0_i32, %c0_i32_0, %c0_i32_1 : i32, i32, i32
  }
  func.func @transform_3(%arg0: i32) -> (i32, i32, i32) {
    %c0_i32 = arith.constant 0 : i32
    %c0_i32_0 = arith.constant 0 : i32
    %c0_i32_1 = arith.constant 0 : i32
    return %arg0, %c0_i32, %c0_i32_0 : i32, i32, i32
  }
  func.func @transform_4(%arg0: i32) -> (i32, i32, i32) {
    %c0_i32 = arith.constant 0 : i32
    %c0_i32_0 = arith.constant 0 : i32
    %c0_i32_1 = arith.constant 0 : i32
    return %arg0, %c0_i32, %c0_i32_0 : i32, i32, i32
  }
}

</mosaic_0001>

<bundles_post_ra>
// kernel: tpu_custom_call.1
= control target key start
LH: loop header
LB: loop body
LE: loop exit
PB: predicated region body
PF: predicated region fallthrough
CT: control target
= control target key end

     0   :  { %9 = vsyncpa [#allocation5], 0  ;;  %s1611_s0 = inlined_call_operand.vmem [shape: bf16[2,1,256], index: 0, kind: input, shape index: {}]   ;;  %s1612_s1 = inlined_call_operand.vmem [shape: bf16[2,8,36], index: 1, kind: input, shape index: {}]   ;;  %s1613_s2 = inlined_call_operand.vmem [shape: f32[2,8,1], index: 2, kind: input, shape index: {}]   ;;  %s1614_s3 = inlined_call_operand.vmem [shape: f32[2,4,256], index: 3, kind: input, shape index: {}]   ;;  %s1615_s4 = inlined_call_operand.hbm [shape: f32[2,4,256], index: 4, kind: output, shape index: {}]  }
   0x1   :  { %11 = vsyncpa [#allocation5 + $0x1], 0  ;;  %s1350_s15 = smov 0   ;;  %s1352_s16 = smov 0  }
   0x2   :  { %s1354_s17 = smov 0   ;;  %s1356_s18 = smov 0  }
   0x3 LB: > { %s1371_s19 = sadd.s32 4294967295, %s1305_s18   ;;  %s1125_s20 = sadd.s32 4294967294, %s1305_s18   ;;  %s1305_s18 = sphi %s1356_s18, %s1623_s18   ;;  %s1301_s17 = sphi %s1354_s17, %s1622_s17   ;;  %s1297_s16 = sphi %s1352_s16, %s1621_s16   ;;  %s1293_s15 = sphi %s1350_s15, %s1620_s15  }
   0x4   : > { %s1375_s21 = sadd.s32 1, %s1305_s18   ;;  %s113_s22 = sadd.s32 1, %s1301_s17 }
   0x5   : > { %s110_s23 = ssub.s32 %s1305_s18, %s1375_s21  ;;  %p123_p0 = scmp.ne.s32.totalorder %s1301_s17, %s1297_s16 }
   0x6   : > { %p111_p1 = scmp.eq.s32.totalorder %s110_s23, 0  ;;  %p124_p2 = scmp.eq.s32.totalorder %s1371_s19, 1 }
   0x7   : > { %p129_p3 = scmp.ne.s32.totalorder %s1297_s16, %s1293_s15  ;;  %p130_p4 = scmp.eq.s32.totalorder %s1125_s20, 1 }
   0x8   : > { %s1386_s24 = scalar_select %p111_p1, %s1301_s17, %s113_s22  }
   0x9   : > { %p1388_p5 = por %p124_p2, %p123_p0  ;;  %p1392_p6 = por %p130_p4, %p129_p3 }
   0xa   : > { %p1128_p7 = scmp.ge.s32.totalorder %s1305_s18, 1  ;;  %p165_p8 = scmp.lt.s32.totalorder %s1305_s18, 3 }
   0xc   : > { %p166_p9 = pnand %p1128_p7, %p165_p8 }
   0xd   : > { %p191_p10 = scmp.lt.s32.totalorder (!%p166_p9), %s1371_s19, 1  ;;  %s1310_s10 = smov (!%p166_p9), 17  }
   0xe   : > { %169 = sbr.rel (%p166_p9) target bundleno = 1033 (0x409), region = 36  ;;  %s1311_s11 = smov (!%p166_p9), 18  }
   0xf   : > { %s1312_s12 = smov (!%p166_p9), 34   ;;  %s1313_s13 = smov (!%p166_p9), 32  }
  0x10   : > { %s1314_s14 = smov (!%p166_p9), 2   ;;  %s1315_s20 = smov (!%p166_p9), 16  }
  0x11   : > { %s1316_s22 = smov (!%p166_p9), 95   ;;  %s1317_s23 = smov (!%p166_p9), 111  }
  0x12   : > { %s1318_s27 = smov (!%p166_p9), 127   ;;  %s1319_s28 = smov (!%p166_p9), 94  }
  0x13   : > { %v216_v0 = vlaneseq  ;;  %v1307_v1 = vmov 1983009808   ;;  %v1136_v3 = vld.sshfl [vmem:[%s1611_s0 + $0x2] sm:$0x11 pattern:$0x75316420] }
  0x14   : > { %v214_v2 = vunpack.c.l.s4 %v1307_v1  ;;  %v1308_v4 = vmov 1966171168   ;;  %s192_s29 = scalar_select %p191_p10, %s1371_s19, 1  ;;  %v330_v10 = vcombine.high %v1136_v3, %v1136_v3  ;;  %vm197_vm0 = vcmask 132096  }
  0x15   : > { %v243_v5 = vunpack.c.l.s4 %v1308_v4  ;;  %v217_v6 = vshrl.u32 %v216_v0, 7  ;;  %v1134_v7 = vld.sshfl [vmem:[%s1611_s0] sm:$0x11 pattern:$0x75316420]  ;;  %vm199_vm1 = vcmask 271496  }
  0x16   : > { %v215_v8 = vunpack.c.0.s8 %v214_v2  ;;  %s1162_s6 = sshll.u32 %s192_s29, 3  ;;  %v241_v11 = vcombine.high %v1134_v7, %v1134_v7  ;;  %v1309_v13 = vmov 0   ;;  %vm226_vm2 = vcmask 1041544   ;;  %s1320_s29 = smov 96  }
  0x17   : > { %v244_v9 = vunpack.c.0.s8 %v243_v5  ;;  %s195_s9 = scalar_lea.vmem %s1614_s3, %s1162_s6  ;;  %198 = vst.msk [vmem:[#allocation2] sm:$0x3] %vm197_vm0, %v1309_v13  ;;  %679 = vmatprep.mubr.bf16.mxu0 %v1309_v13  ;;  %1220 = vset.pattern.permute.xlu0 %v1309_v13  ;;  %v261_v16 = vsub.s32 0, %v217_v6  ;;  %vm227_vm3 = vcmask 1043458   ;;  %vm229_vm5 = vcmask 136196   ;;  %s1321_s30 = smov 110  }
  0x18   : > { %200 = vst.msk [vmem:[#allocation2 + $0x4] sm:$0x3] %vm199_vm1, %v1309_v13  ;;  %v1409_v14 = vld [vmem:[%s195_s9] sm:$0xff]  ;;  %v1411_v15 = vsub.s32 %v215_v8, %v217_v6  ;;  %1027 = vmatprep.mubr.bf16.mxu1 %v1309_v13  ;;  %1221 = vset.pattern.permute.xlu1 %v1309_v13  ;;  %vm228_vm4 = vmor %vm227_vm3, %vm226_vm2  ;;  %vm223_vm6 = vcmask 138240   ;;  %vm568_vm8 = vcmask 277504   ;;  %vm505_vm9 = vcmask 261120  }
  0x19   : > { %v247_v12 = vsub.s32 %v244_v9, %v217_v6  ;;  %v1415_v17 = vcombine.high %v1409_v14, %v1409_v14  ;;  %vm1427_vm7 = vmor %vm229_vm5, %vm228_vm4  ;;  %vm470_vm10 = vcmask 146432   ;;  %vm372_vm11 = vcmask 15360   ;;  %s1322_s5 = smov 126   ;;  %s1323_s6 = smov 112  }
  0x1a   : > { %vm407_vm12 = vcmask 130048   ;;  %vm315_vm13 = vcmask 1043456   ;;  %vm462_vm14 = vcmask 908288   ;;  %vm560_vm15 = vcmask 777216  }
  0x1b   : > { %v337_v18 = vrot.slane %v1136_v3, %v247_v12  ;;  %v344_v19 = vrot.slane %v330_v10, %v247_v12  ;;  %v248_v20 = vrot.slane %v1134_v7, %v247_v12  ;;  %v255_v21 = vrot.slane %v241_v11, %v247_v12 }
  0x1c   : > { %v1133_v22 = vpack.c.bf16 %v1415_v17, %v1409_v14  ;;  %vm595_vm0 = vcmask 769024   ;;  %vm317_vm1 = vcmask 1039360   ;;  %vm532_vm2 = vcmask 785408  }
  0x1d   : > { %v346_v23 = vpack.i.b16 %v337_v18, %v337_v18  ;;  %v353_v24 = vpack.i.b16 %v344_v19, %v344_v19  ;;  %v257_v25 = vpack.i.b16 %v248_v20, %v248_v20  ;;  %v264_v26 = vpack.i.b16 %v255_v21, %v255_v21 }
  0x1e   : > { %v219_v27 = vrot.slane %v1133_v22, %v1411_v15  ;;  %vm399_vm3 = vcmask 1031168   ;;  %vm497_vm4 = vcmask 900096   ;;  %vm434_vm5 = vcmask 916480  }
  0x1f   : > { %v351_v28 = vrot.slane %v346_v23, %v261_v16  ;;  %v358_v29 = vrot.slane %v353_v24, %v261_v16  ;;  %v262_v30 = vrot.slane %v257_v25, %v261_v16  ;;  %v269_v31 = vrot.slane %v264_v26, %v261_v16 }
  0x20   : > { %220 = vrot.lane.b32.xlu0 %v219_v27, %s1310_s10 }
  0x21   : > { %v361_v32 = vcombine.low %v351_v28, %v358_v29  ;;  %v272_v33 = vcombine.low %v262_v30, %v269_v31 }
  0x23   : > { %v368_v34 = vrot.slane %v361_v32, %v1411_v15  ;;  %v1423_v35 = vrot.slane %v272_v33, %v1411_v15  ;;  %v605_v33 = vld [vmem:[%s1613_s2] sm:$0xff] }
  0x25   : > { %467 = vrot.lane.b32.xlu1 %v368_v34, %s1311_s11  ;;  %565 = vrot.lane.b32.xlu0 %v368_v34, %s1312_s12 }
  0x29   : > { %502 = vrot.lane.b32.xlu1 %v1423_v35, %s1313_s13  ;;  %369 = vrot.lane.b32.xlu0 %v368_v34, %s1314_s14 }
  0x2d   : > { %404 = vrot.lane.b32.xlu1 %v1423_v35, %s1315_s20  ;;  %s188_s20 = sand.u32 1, %s1297_s16  }
  0x92   : > { %v221_v36 = vpop.permute.xlu0 %220 }
  0x93   : > { %v222_v38 = vrot.slane %v221_v36, 6 }
  0x95   : > { %v224_v39 = vsel %vm223_vm6, %v222_v38, %v221_v36 }
  0x96   : > { %231 = vst.msk [vmem:[#allocation2] sm:$0x3f] %vm1427_vm7, %v224_v39 }
  0x97   : > { %v468_v40 = vpop.permute.xlu1 %467  ;;  %v566_v41 = vpop.permute.xlu0 %565 }
  0x98   : > { %v567_v42 = vrot.slane %v566_v41, 6  ;;  %v469_v54 = vrot.slane %v468_v40, 6 }
  0x9a   : > { %v1434_v46 = vsel %vm568_vm8, %v567_v42, %v566_v41  ;;  %v1447_v63 = vsel %vm470_vm10, %v469_v54, %v468_v40  ;;  %vm640_vm8 = vcmask 1041408  }
  0x9b   : > { %v503_v43 = vpop.permute.xlu1 %502  ;;  %v370_v0 = vpop.permute.xlu0 %369 }
  0x9c   : > { %v504_v47 = vrot.slane %v503_v43, 6  ;;  %v371_v5 = vrot.slane %v370_v0, 6 }
  0x9d   : > { %v232_v44 = vld [vmem:[#allocation2] sm:$0xf] }
  0x9e   : > { %v564_v45 = vld [vmem:[#allocation2] sm:$0x3f]  ;;  %v281_v48 = vmul.bf16 %v1423_v35, %v232_v44  ;;  %v1440_v56 = vsel %vm505_vm9, %v504_v47, %v503_v43  ;;  %v1458_v12 = vsel %vm372_vm11, %v371_v5, %v370_v0  ;;  %vm636_vm9 = vcmask 293888  }
  0x9f   : > { %v536_v49 = vld [vmem:[#allocation2] sm:$0x3f]  ;;  %v571_v51 = vmul.bf16 %v1434_v46, %v564_v45  ;;  %v405_v6 = vpop.permute.xlu1 %404 }
  0xa0   : > { %v438_v50 = vld [vmem:[#allocation2] sm:$0x3f]  ;;  %1135 = vst.sshfl [vmem:[#allocation3] sm:$0xf pattern:$0x76325410] %v281_v48  ;;  %v552_v52 = vrot.slane %v536_v49, %v1411_v15  ;;  %v538_v4 = vcombine.low %v536_v49, %v536_v49 }
  0xa1   : > { %v447_v53 = vrot.slane %v438_v50, %v1411_v15  ;;  %v501_v55 = vld [vmem:[#allocation2] sm:$0x3f]  ;;  %v580_v60 = vrot.slane %v571_v51, %v1411_v15  ;;  %v440_v61 = vcombine.high %v438_v50, %v438_v50  ;;  %v573_v7 = vcombine.high %v571_v51, %v571_v51 }
  0xa2   : > { %v292_v57 = vld [vmem:[#allocation2] sm:$0x3f]  ;;  %555 = vrot.lane.b32.xlu1 %v552_v52, %s1316_s22  ;;  %v508_v58 = vmul.bf16 %v1440_v56, %v501_v55  ;;  %v545_v9 = vrot.slane %v538_v4, %v1411_v15  ;;  %v406_v13 = vrot.slane %v405_v6, 6 }
  0xa3   : > { %455 = vrot.lane.b32.xlu0 %v447_v53, %s1317_s23  ;;  %v308_v59 = vrot.slane %v292_v57, %v1411_v15  ;;  %v466_v62 = vld [vmem:[#allocation2] sm:$0x3f]  ;;  %v454_v2 = vrot.slane %v440_v61, %v1411_v15  ;;  %v294_v10 = vcombine.low %v292_v57, %v292_v57  ;;  %v587_v20 = vrot.slane %v573_v7, %v1411_v15 }
  0xa4   : > { %v473_v1 = vmul.bf16 %v1447_v63, %v466_v62  ;;  %v517_v3 = vrot.slane %v508_v58, %v1411_v15  ;;  %v321_v11 = vld [vmem:[#allocation2] sm:$0x3f]  ;;  %v510_v16 = vcombine.high %v508_v58, %v508_v58  ;;  %v1465_v21 = vsel %vm407_vm12, %v406_v13, %v405_v6 }
  0xa5   : > { %v375_v18 = vmul.bf16 %v1458_v12, %v321_v11  ;;  %v301_v19 = vrot.slane %v294_v10, %v1411_v15  ;;  %v403_v23 = vld [vmem:[#allocation2] sm:$0x3f] }
  0xa6   : > { %311 = vrot.lane.b32.xlu1 %v308_v59, %s1318_s27  ;;  %v489_v8 = vrot.slane %v473_v1, %v1411_v15  ;;  %v475_v22 = vcombine.low %v473_v1, %v473_v1  ;;  %v410_v25 = vmul.bf16 %v1465_v21, %v403_v23  ;;  %v524_v26 = vrot.slane %v510_v16, %v1411_v15 }
  0xa7   : > { %588 = vrot.lane.b32.xlu0 %v580_v60, %s1319_s28  ;;  %v377_v24 = vcombine.high %v375_v18, %v375_v18  ;;  %v384_v27 = vrot.slane %v375_v18, %v1411_v15 }
  0xa8   : > { %v412_v28 = vcombine.low %v410_v25, %v410_v25  ;;  %v482_v29 = vrot.slane %v475_v22, %v1411_v15  ;;  %v426_v32 = vrot.slane %v410_v25, %v1411_v15 }
  0xa9   : > { %v391_v30 = vrot.slane %v377_v24, %v1411_v15 }
  0xaa   : > { %457 = vrot.lane.b32.xlu1 %v454_v2, %s1317_s23  ;;  %v419_v31 = vrot.slane %v412_v28, %v1411_v15 }
  0xab   : > { %525 = vrot.lane.b32.xlu0 %v517_v3, %s1320_s29 }
  0xae   : > { %492 = vrot.lane.b32.xlu1 %v489_v8, %s1321_s30 }
  0xaf   : > { %553 = vrot.lane.b32.xlu0 %v545_v9, %s1316_s22 }
  0xb2   : > { %590 = vrot.lane.b32.xlu1 %v587_v20, %s1319_s28 }
  0xb3   : > { %309 = vrot.lane.b32.xlu0 %v301_v19, %s1318_s27 }
  0xb6   : > { %527 = vrot.lane.b32.xlu1 %v524_v26, %s1320_s29 }
  0xb7   : > { %392 = vrot.lane.b32.xlu0 %v384_v27, %s1322_s5 }
  0xba   : > { %394 = vrot.lane.b32.xlu1 %v391_v30, %s1322_s5 }
  0xbb   : > { %490 = vrot.lane.b32.xlu0 %v482_v29, %s1321_s30 }
  0xbe   : > { %429 = vrot.lane.b32.xlu1 %v426_v32, %s1323_s6 }
  0xbf   : > { %427 = vrot.lane.b32.xlu0 %v419_v31, %s1323_s6 }
  0xc3   : > { %608 = vperm.xlu0 %1220, %v605_v33  }
 0x114   : > { %v556_v34 = vpop.permute.xlu1 %555 }
 0x115   : > { %v456_v36 = vpop.permute.xlu0 %455  ;;  %v558_v49 = vrot.slane %v556_v34, 4 }
 0x116   : > { %v459_v42 = vrot.slane %v456_v36, 4 }
 0x118   : > { %v312_v38 = vpop.permute.xlu1 %311 }
 0x119   : > { %v589_v39 = vpop.permute.xlu0 %588  ;;  %v314_v55 = vrot.slane %v312_v38, 4  ;;  %v599_v38 = vld [vmem:[%s1612_s1] sm:$0xf] }
 0x11a   : > { %v592_v57 = vrot.slane %v589_v39, 4 }
 0x11c   : > { %v458_v40 = vpop.permute.xlu1 %457 }
 0x11d   : > { %v526_v41 = vpop.permute.xlu0 %525  ;;  %v460_v43 = vrot.slane %v458_v40, 4 }
 0x11e   : > { %v529_v3 = vrot.slane %v526_v41, 4 }
 0x11f   : > { %v461_v44 = vsel %vm315_vm13, %v459_v42, %v460_v43 }
 0x120   : > { %v463_v45 = vsel %vm462_vm14, %v456_v36, %v461_v44  ;;  %v493_v47 = vpop.permute.xlu1 %492 }
 0x121   : > { %v554_v48 = vpop.permute.xlu0 %553  ;;  %465 = vst [vmem:[#allocation3 + $0x10] sm:$0x33] %v463_v45  ;;  %v495_v9 = vrot.slane %v493_v47, 4 }
 0x122   : > { %v557_v50 = vrot.slane %v554_v48, 4 }
 0x124   : > { %v559_v51 = vsel %vm315_vm13, %v557_v50, %v558_v49  ;;  %v591_v53 = vpop.permute.xlu1 %590 }
 0x125   : > { %v561_v52 = vsel %vm560_vm15, %v554_v48, %v559_v51  ;;  %v310_v54 = vpop.permute.xlu0 %309  ;;  %v593_v58 = vrot.slane %v591_v53, 4 }
 0x126   : > { %563 = vst [vmem:[#allocation3 + $0x18] sm:$0xcc] %v561_v52  ;;  %v313_v59 = vrot.slane %v310_v54, 4 }
 0x127   : > { %v594_v60 = vsel %vm315_vm13, %v592_v57, %v593_v58 }
 0x128   : > { %v316_v61 = vsel %vm315_vm13, %v313_v59, %v314_v55  ;;  %v596_v62 = vsel %vm595_vm0, %v589_v39, %v594_v60  ;;  %v528_v1 = vpop.permute.xlu1 %527 }
 0x129   : > { %v318_v0 = vsel %vm317_vm1, %v310_v54, %v316_v61  ;;  %v393_v2 = vpop.permute.xlu0 %392  ;;  %598 = vst [vmem:[#allocation3 + $0x20] sm:$0x33] %v596_v62  ;;  %v530_v4 = vrot.slane %v528_v1, 4 }
 0x12a   : > { %320 = vst [vmem:[#allocation3] sm:$0xcc] %v318_v0  ;;  %v396_v10 = vrot.slane %v393_v2, 4 }
 0x12b   : > { %v531_v5 = vsel %vm315_vm13, %v529_v3, %v530_v4 }
 0x12c   : > { %v533_v6 = vsel %vm532_vm2, %v526_v41, %v531_v5  ;;  %v395_v7 = vpop.permute.xlu1 %394 }
 0x12d   : > { %v491_v8 = vpop.permute.xlu0 %490  ;;  %535 = vst [vmem:[#allocation3 + $0x18] sm:$0x33] %v533_v6  ;;  %v397_v11 = vrot.slane %v395_v7, 4 }
 0x12e   : > { %v494_v13 = vrot.slane %v491_v8, 4 }
 0x12f   : > { %v398_v16 = vsel %vm315_vm13, %v396_v10, %v397_v11 }
 0x130   : > { %v496_v18 = vsel %vm315_vm13, %v494_v13, %v495_v9  ;;  %v400_v19 = vsel %vm399_vm3, %v393_v2, %v398_v16  ;;  %v430_v22 = vpop.permute.xlu1 %429  ;;  %v604_v24 = vld [vmem:[#allocation3 + $0x20] sm:$0x33] }
 0x131   : > { %v498_v20 = vsel %vm497_vm4, %v491_v8, %v496_v18  ;;  %v428_v23 = vpop.permute.xlu0 %427  ;;  %402 = vst [vmem:[#allocation3 + $0x8] sm:$0x33] %v400_v19  ;;  %v432_v25 = vrot.slane %v430_v22, 4  ;;  %v1142_v27 = vcombine.high %v604_v24, %v604_v24  ;;  %v1141_v28 = vcombine.low %v604_v24, %v604_v24 }
 0x132   : > { %500 = vst [vmem:[#allocation3 + $0x10] sm:$0xcc] %v498_v20  ;;  %v431_v26 = vrot.slane %v428_v23, 4 }
 0x133   : > { %1143 = vmatprep.subr.msk.bf16.mxu0 %vm640_vm8, %v1142_v27  ;;  %v642_v30 = vsel %vm640_vm8, %v1141_v28, 0 }
 0x134   : > { %v433_v29 = vsel %vm315_vm13, %v431_v26, %v432_v25  ;;  %658 = vmatpush1.bf16.msra.mxu0 %v642_v30 }
 0x135   : > { %v435_v31 = vsel %vm434_vm5, %v428_v23, %v433_v29 }
 0x136   : > { %437 = vst [vmem:[#allocation3 + $0x8] sm:$0xcc] %v435_v31 }
 0x139   : > { %v1228_v32 = vld [vmem:[#allocation3 + $0x14] ss:$8 sps:$4 sm:$0xff]   ;;  %v1230_v33 = vld [vmem:[#allocation3 + $0x10] ss:$8 sps:$4 sm:$0xff]  }
 0x13a   : > { %659 = vmatprep.subr.bf16.mxu0 %v1228_v32 }
 0x13b   : > { %660 = vmatpush1.bf16.msra.mxu0 %v1230_v33 }
 0x13d   : > { %v1231_v34 = vld [vmem:[#allocation3 + $0x4] ss:$8 sps:$4 sm:$0xff]   ;;  %v1233_v36 = vld [vmem:[#allocation3] ss:$8 sps:$4 sm:$0xff]  }
 0x13e   : > { %661 = vmatprep.subr.bf16.mxu0 %v1231_v34  ;;  %v609_v39 = vpop.permute.xlu0 %608 }
 0x13f   : > { %662 = vmatpush1.bf16.msra.mxu0 %v1233_v36 }
 0x142   : > { %1144 = vmatmul.mubr.msk.bf16.vlgmr.msra.gmra.mxu0 %vm636_vm9, %v599_v38 }
 0x202   : > { %v681_v40 = vpop.f32.mrf.mxu0 }
 0x203   : > { %v682_v41 = vadd.f32 %v681_v40, %v609_v39 }
 0x204   : > { %v683_v42 = vpop.f32.mrf.mxu0 }
 0x205   : > { %v690_v43 = vrot.slane %v682_v41, 4  ;;  %v684_v44 = vadd.f32 %v683_v42, %v609_v39 }
 0x206   : > { %v685_v45 = vpop.f32.mrf.mxu0 }
 0x207   : > { %v691_v47 = vrot.slane %v684_v44, 4  ;;  %v694_v49 = vmax.f32 %v682_v41, %v690_v43 }
 0x208   : > { %v686_v48 = vpop.f32.mrf.mxu0 }
 0x209   : > { %v695_v50 = vmax.f32 %v684_v44, %v691_v47 }
 0x20b   : > { %v1145_v51 = vpack.c.bf16 %v695_v50, %v694_v49 }
 0x20d   : > { %v707_v52 = vrot.slane %v1145_v51, %v1411_v15 }
 0x20f   : > { %708 = vrot.lane.b32.xlu1 %v707_v52, %s1310_s10 }
 0x281   : > { %v709_v53 = vpop.permute.xlu1 %708 }
 0x282   : > { %v710_v54 = vrot.slane %v709_v53, 6 }
 0x284   : > { %v711_v55 = vsel %vm223_vm6, %v710_v54, %v709_v53 }
 0x285   : > { %713 = vst.msk [vmem:[#allocation2] sm:$0x3f] %vm1427_vm7, %v711_v55 }
 0x28c   : > { %v892_v57 = vld [vmem:[#allocation2] sm:$0x3f] }
 0x28d   : > { %v809_v58 = vld [vmem:[#allocation2] sm:$0x3f]  ;;  %v908_v60 = vrot.slane %v892_v57, %v1411_v15  ;;  %v894_v9 = vcombine.low %v892_v57, %v892_v57 }
 0x28e   : > { %v919_v59 = vld [vmem:[#allocation2] sm:$0x3f]  ;;  %v818_v61 = vrot.slane %v809_v58, %v1411_v15  ;;  %v811_v5 = vcombine.high %v809_v58, %v809_v58 }
 0x28f   : > { %v920_v62 = vmul.bf16 %v919_v59, %v1434_v46  ;;  %v726_v0 = vld [vmem:[#allocation2] sm:$0x3f]  ;;  %911 = vrot.lane.b32.xlu0 %v908_v60, %s1316_s22 }
 0x290   : > { %v864_v1 = vld [vmem:[#allocation2] sm:$0x3f]  ;;  %826 = vrot.lane.b32.xlu1 %v818_v61, %s1317_s23  ;;  %v742_v37 = vrot.slane %v726_v0, %v1411_v15  ;;  %v825_v8 = vrot.slane %v811_v5, %v1411_v15  ;;  %v728_v13 = vcombine.low %v726_v0, %v726_v0 }
 0x291   : > { %v714_v2 = vld [vmem:[#allocation2] sm:$0xf]  ;;  %v929_v3 = vrot.slane %v920_v62, %v1411_v15  ;;  %v865_v4 = vmul.bf16 %v864_v1, %v1440_v56  ;;  %v901_v56 = vrot.slane %v894_v9, %v1411_v15  ;;  %v922_v11 = vcombine.high %v920_v62, %v920_v62 }
 0x292   : > { %v836_v6 = vld [vmem:[#allocation2] sm:$0x3f]  ;;  %v715_v7 = vmul.bf16 %v714_v2, %v1423_v35  ;;  %v735_v19 = vrot.slane %v728_v13, %v1411_v15 }
 0x293   : > { %745 = vrot.lane.b32.xlu0 %v742_v37, %s1318_s27  ;;  %v874_v46 = vrot.slane %v865_v4, %v1411_v15  ;;  %v837_v10 = vmul.bf16 %v836_v6, %v1447_v63  ;;  %v753_v16 = vld [vmem:[#allocation2] sm:$0x3f]  ;;  %v936_v18 = vrot.slane %v922_v11, %v1411_v15  ;;  %v867_v63 = vcombine.high %v865_v4, %v865_v4 }
 0x294   : > { %937 = vrot.lane.b32.xlu1 %v929_v3, %s1319_s28  ;;  %1146 = vst.sshfl [vmem:[#allocation3] sm:$0xf pattern:$0x76325410] %v715_v7  ;;  %v754_v20 = vmul.bf16 %v753_v16, %v1458_v12  ;;  %v781_v22 = vld [vmem:[#allocation2] sm:$0x3f] }
 0x295   : > { %v853_v35 = vrot.slane %v837_v10, %v1411_v15  ;;  %v839_v23 = vcombine.low %v837_v10, %v837_v10  ;;  %v881_v24 = vrot.slane %v867_v63, %v1411_v15  ;;  %v782_v27 = vmul.bf16 %v781_v22, %v1465_v21  ;;  %v1148_v21 = vld [vmem:[%s1613_s2 + $0x8] sm:$0xff] }
 0x296   : > { %v763_v25 = vrot.slane %v754_v20, %v1411_v15  ;;  %v756_v26 = vcombine.high %v754_v20, %v754_v20 }
 0x297   : > { %828 = vrot.lane.b32.xlu0 %v825_v8, %s1317_s23  ;;  %v846_v12 = vrot.slane %v839_v23, %v1411_v15  ;;  %v784_v29 = vcombine.low %v782_v27, %v782_v27  ;;  %v798_v30 = vrot.slane %v782_v27, %v1411_v15  ;;  %s1163_s23 = sshll.u32 %s1371_s19, 7  ;;  %s1324_s19 = smov [#allocation4]  }
 0x298   : > { %882 = vrot.lane.b32.xlu1 %v874_v46, %s1320_s29  ;;  %v770_v28 = vrot.slane %v756_v26, %v1411_v15  ;;  %s1249_s8 = sshll.u32 %s1324_s19, 4  ;;  %s1250_s8 = int_to_ptr.vmem [resolvable:$false] %s1249_s8 }
 0x299   : > { %v791_v31 = vrot.slane %v784_v29, %v1411_v15  ;;  %s1251_s9 = scalar_lea.vmem %s1250_s8, 256 }
 0x29b   : > { %856 = vrot.lane.b32.xlu0 %v853_v35, %s1321_s30 }
 0x29c   : > { %909 = vrot.lane.b32.xlu1 %v901_v56, %s1316_s22  ;;  %s1129_s22 = sshll.u32 %s188_s20, 3 }
 0x29f   : > { %939 = vrot.lane.b32.xlu0 %v936_v18, %s1319_s28 }
 0x2a0   : > { %743 = vrot.lane.b32.xlu1 %v735_v19, %s1318_s27  ;;  %s190_s27 = scalar_lea.vmem [#allocation4], %s1129_s22 }
 0x2a1   : > { %s1066_s28 = sshll.u32 %s190_s27, 4  ;;  %s1067_s28 = int_to_ptr.vmem [resolvable:$true] %s1066_s28 }
 0x2a2   : > { %s1245_s7 = scalar_lea.vmem %s1067_s28, 128  ;;  %p1252_p0 = scmp.lt.s32.totalorder %s1067_s28, %s1250_s8 }
 0x2a3   : > { %884 = vrot.lane.b32.xlu0 %v881_v24, %s1320_s29  ;;  %p1246_p11 = scmp.ne.s32.totalorder %s1067_s28, %s1245_s7  ;;  %p1253_p1 = scmp.lt.s32.totalorder %s1251_s9, %s1245_s7 }
 0x2a4   : > { %771 = vrot.lane.b32.xlu1 %v763_v25, %s1322_s5 }
 0x2a5   : > { %p1247_p12 = pnand %p1246_p11, %p1388_p5  ;;  %p1254_p2 = por %p1253_p1, %p1252_p0 }
 0x2a7   : > { %773 = vrot.lane.b32.xlu0 %v770_v28, %s1322_s5  ;;  %v1147_v28 = vld [vmem:[%s1612_s1 + $0x4] sm:$0xf]  ;;  %s1064_s5 = scalar_lea.hbm %s1615_s4, %s1163_s23  ;;  %p1248_p13 = pneg %p1247_p12 }
 0x2a8   : > { %854 = vrot.lane.b32.xlu1 %v846_v12, %s1321_s30 }
 0x2a9   : > { %p1255_p3 = pnand %p1254_p2, %p1248_p13 }
 0x2ab   : > { %801 = vrot.lane.b32.xlu0 %v798_v30, %s1323_s6 }
 0x2ac   : > { %799 = vrot.lane.b32.xlu1 %v791_v31, %s1323_s6  ;;  %s1052_s6 = scalar_lea.sflag [#allocation5], %s188_s20 }
 0x2b0   : > { %958 = vperm.xlu1 %1221, %v1148_v21  }
 0x301   : > { %v912_v32 = vpop.permute.xlu0 %911 }
 0x302   : > { %v827_v33 = vpop.permute.xlu1 %826  ;;  %v914_v45 = vrot.slane %v912_v32, 4 }
 0x303   : > { %v830_v40 = vrot.slane %v827_v33, 4 }
 0x305   : > { %v746_v36 = vpop.permute.xlu0 %745 }
 0x306   : > { %v938_v34 = vpop.permute.xlu1 %937  ;;  %v748_v53 = vrot.slane %v746_v36, 4 }
 0x307   : > { %v941_v52 = vrot.slane %v938_v34, 4 }
 0x309   : > { %v829_v39 = vpop.permute.xlu0 %828 }
 0x30a   : > { %v883_v38 = vpop.permute.xlu1 %882  ;;  %v831_v41 = vrot.slane %v829_v39, 4 }
 0x30b   : > { %v886_v0 = vrot.slane %v883_v38, 4 }
 0x30c   : > { %v832_v42 = vsel %vm315_vm13, %v830_v40, %v831_v41 }
 0x30d   : > { %v833_v15 = vsel %vm462_vm14, %v827_v33, %v832_v42  ;;  %v857_v44 = vpop.permute.xlu0 %856 }
 0x30e   : > { %v910_v43 = vpop.permute.xlu1 %909  ;;  %835 = vst [vmem:[#allocation3 + $0x10] sm:$0x33] %v833_v15  ;;  %v859_v5 = vrot.slane %v857_v44, 4 }
 0x30f   : > { %v913_v47 = vrot.slane %v910_v43, 4 }
 0x311   : > { %v915_v48 = vsel %vm315_vm13, %v913_v47, %v914_v45  ;;  %v940_v50 = vpop.permute.xlu0 %939 }
 0x312   : > { %v916_v49 = vsel %vm560_vm15, %v910_v43, %v915_v48  ;;  %v744_v51 = vpop.permute.xlu1 %743  ;;  %v942_v54 = vrot.slane %v940_v50, 4 }
 0x313   : > { %918 = vst [vmem:[#allocation3 + $0x18] sm:$0xcc] %v916_v49  ;;  %v747_v55 = vrot.slane %v744_v51, 4 }
 0x314   : > { %v943_v57 = vsel %vm315_vm13, %v941_v52, %v942_v54 }
 0x315   : > { %v749_v58 = vsel %vm315_vm13, %v747_v55, %v748_v53  ;;  %v944_v59 = vsel %vm595_vm0, %v938_v34, %v943_v57  ;;  %v885_v61 = vpop.permute.xlu0 %884 }
 0x316   : > { %v750_v60 = vsel %vm317_vm1, %v744_v51, %v749_v58  ;;  %v772_v62 = vpop.permute.xlu1 %771  ;;  %946 = vst [vmem:[#allocation3 + $0x20] sm:$0x33] %v944_v59  ;;  %v887_v1 = vrot.slane %v885_v61, 4 }
 0x317   : > { %752 = vst [vmem:[#allocation3] sm:$0xcc] %v750_v60  ;;  %v775_v6 = vrot.slane %v772_v62, 4 }
 0x318   : > { %v888_v2 = vsel %vm315_vm13, %v886_v0, %v887_v1 }
 0x319   : > { %v889_v3 = vsel %vm532_vm2, %v883_v38, %v888_v2  ;;  %v774_v37 = vpop.permute.xlu0 %773 }
 0x31a   : > { %v855_v4 = vpop.permute.xlu1 %854  ;;  %891 = vst [vmem:[#allocation3 + $0x18] sm:$0x33] %v889_v3  ;;  %v776_v7 = vrot.slane %v774_v37, 4 }
 0x31b   : > { %v858_v46 = vrot.slane %v855_v4, 4 }
 0x31c   : > { %v777_v8 = vsel %vm315_vm13, %v775_v6, %v776_v7 }
 0x31d   : > { %v860_v9 = vsel %vm315_vm13, %v858_v46, %v859_v5  ;;  %v778_v10 = vsel %vm399_vm3, %v772_v62, %v777_v8  ;;  %v802_v35 = vpop.permute.xlu0 %801  ;;  %v953_v13 = vld [vmem:[#allocation3 + $0x20] sm:$0x33] }
 0x31e   : > { %v861_v56 = vsel %vm497_vm4, %v855_v4, %v860_v9  ;;  %v800_v11 = vpop.permute.xlu1 %799  ;;  %780 = vst [vmem:[#allocation3 + $0x8] sm:$0x33] %v778_v10  ;;  %v804_v16 = vrot.slane %v802_v35, 4  ;;  %v1154_v19 = vcombine.high %v953_v13, %v953_v13  ;;  %v1153_v63 = vcombine.low %v953_v13, %v953_v13 }
 0x31f   : > { %863 = vst [vmem:[#allocation3 + $0x10] sm:$0xcc] %v861_v56  ;;  %v803_v18 = vrot.slane %v800_v11, 4 }
 0x320   : > { %1155 = vmatprep.subr.msk.bf16.mxu1 %vm640_vm8, %v1154_v19  ;;  %v990_v22 = vsel %vm640_vm8, %v1153_v63, 0 }
 0x321   : > { %v805_v20 = vsel %vm315_vm13, %v803_v18, %v804_v16  ;;  %1006 = vmatpush1.bf16.msra.mxu1 %v990_v22 }
 0x322   : > { %v806_v23 = vsel %vm434_vm5, %v800_v11, %v805_v20 }
 0x323   : > { %808 = vst [vmem:[#allocation3 + $0x8] sm:$0xcc] %v806_v23 }
 0x326   : > { %v1239_v24 = vld [vmem:[#allocation3 + $0x14] ss:$8 sps:$4 sm:$0xff]   ;;  %v1241_v25 = vld [vmem:[#allocation3 + $0x10] ss:$8 sps:$4 sm:$0xff]  }
 0x327   : > { %1007 = vmatprep.subr.bf16.mxu1 %v1239_v24 }
 0x328   : > { %1008 = vmatpush1.bf16.msra.mxu1 %v1241_v25 }
 0x32a   : > { %v1242_v26 = vld [vmem:[#allocation3 + $0x4] ss:$8 sps:$4 sm:$0xff]   ;;  %v1244_v27 = vld [vmem:[#allocation3] ss:$8 sps:$4 sm:$0xff]  }
 0x32b   : > { %1009 = vmatprep.subr.bf16.mxu1 %v1242_v26  ;;  %v959_v12 = vpop.permute.xlu1 %958 }
 0x32c   : > { %1010 = vmatpush1.bf16.msra.mxu1 %v1244_v27 }
 0x32f   : > { %1156 = vmatmul.mubr.msk.bf16.vlgmr.msra.gmra.mxu1 %vm636_vm9, %v1147_v28 }
 0x3ef   : > { %v1029_v29 = vpop.f32.mrf.mxu1 }
 0x3f0   : > { %v1030_v30 = vadd.f32 %v1029_v29, %v959_v12 }
 0x3f1   : > { %v1031_v31 = vpop.f32.mrf.mxu1 }
 0x3f2   : > { %v1038_v21 = vrot.slane %v1030_v30, 4  ;;  %v1032_v32 = vadd.f32 %v1031_v31, %v959_v12 }
 0x3f3   : > { %v1033_v33 = vpop.f32.mrf.mxu1 }
 0x3f4   : > { %v1042_v34 = vmax.f32 %v1030_v30, %v1038_v21  ;;  %v1039_v36 = vrot.slane %v1032_v32, 4 }
 0x3f5   : > { %v1034_v38 = vpop.f32.mrf.mxu1 }
 0x3f6   : > { %v1043_v39 = vmax.f32 %v1032_v32, %v1039_v36  ;;  %v1044_v40 = vadd.f32 %v1042_v34, %v1409_v14 }
 0x3f8   : > { %v1045_v41 = vadd.f32 %v1043_v39, %v1415_v17 }
 0x3fa   : > { %v1048_v42 = vcombine.low %v1044_v40, %v1045_v41 }
 0x3fc   : > { %1050 = vst [vmem:[%s190_s27] sm:$0xff] %v1048_v42 }
 0x3fd   : > { %1258 = shalt.err (!%p1255_p3)
}
 0x3fe   : > { %s1259_s11 = scalar_lea.hbm %s1064_s5, 128  ;;  %s1263_s13 = scalar_lea.hbm %s1615_s4, 256 }
 0x3ff   : > { %p1260_p4 = scmp.ne.s32.totalorder %s1064_s5, %s1259_s11  ;;  %p1264_p9 = scmp.lt.s32.totalorder %s1064_s5, %s1615_s4 }
 0x400   : > { %p1265_p10 = scmp.lt.s32.totalorder %s1263_s13, %s1259_s11 }
 0x401   : > { %p1261_p7 = pnand %p1260_p4, %p1388_p5 }
 0x402   : > { %p1266_p11 = por %p1265_p10, %p1264_p9 }
 0x403   : > { %p1262_p8 = pneg %p1261_p7 }
 0x405   : > { %p1267_p12 = pnand %p1266_p11, %p1262_p8 }
 0x407   : > { %1270 = shalt.err (!%p1267_p12)
}
 0x408   : > { %1164 = dma.vmem_to_hbm [thread:$0]  (%p1388_p5), %s1067_s28, 128, %s1064_s5, %s1052_s6  }
 0x409 PF: > { %p1170_p13 = scmp.ge.s32.totalorder %s1305_s18, 2  ;;  %s1078_s22 = sand.u32 1, %s1293_s15  }
 0x40a   : > { %s1079_s23 = scalar_lea.sflag [#allocation5], %s1078_s22 }
 0x40b   : > { %p1167_p0 = pnand %p1170_p13, %p1392_p6 }
 0x40d   : > { %p1168_p1 = pneg %p1167_p0 }
 0x40f   : > { %1288 = dma.done.wait (%p1168_p1), %s1079_s23, 128  }
 0x410   : > { %1290 = vsyncadd (%p1168_p1), %s1079_s23, 4294967168  ;;  %p14_p2 = scmp.ge.s32.totalorder %s1375_s21, 4   ;;  %s1620_s15 = smov %s1297_s16 }
 0x411   : > { %s1621_s16 = smov %s1301_s17  ;;  %s1622_s17 = smov %s1386_s24 }
 0x412   : > { %s1623_s18 = smov %s1375_s21  ;;  %16 = sbr.rel (!%p14_p2) target bundleno = 3 (0x3), region = 74 }
 0x417   :  { %1084 = vsyncpa [#allocation5], 1 }
 0x418   :  { %1086 = vsyncpa [#allocation5 + $0x1], 1 }

</bundles_post_ra>
